<compile_context>
chip_gen: v7x
topology: tpu7x:2x2x1
jax: 0.10.0
libtpu: 0.0.40
codegen_flags: <defaults>
</compile_context>

<pallas_src>
import functools

import jax
import jax.numpy as jnp
from jax import lax
from jax.experimental import pallas as pl
from jax.experimental.pallas import tpu as pltpu

LN_EPS = 1e-5      # torch.nn.LayerNorm default eps
HALO_BLK = 128     # halo block size along time (lane-dense 128-multiple blocks)


def _conv_relu_norm_kernel(*refs, seq_len, tile_t, kernel_size, has_halo, need_mask):
    """One (batch, time-tile) grid step.

    With halos (kernel_size > 1):
      refs = (x_main, x_lh, x_rh, w, b, gamma, beta, out)
    Without halos (kernel_size == 1):
      refs = (x_main, w, b, gamma, beta, out)

    x_main : (1, Cin, TILE_T)    current time tile of the unpadded input
    x_lh   : (1, Cin, HALO_BLK)  128-lane block just left of the tile (index clamped)
    x_rh   : (1, Cin, HALO_BLK)  128-lane block just right of the tile (index clamped)
    w      : (Cout, K*Cin)       im2col conv weight (lhs of the single matmul)
    b, gamma, beta : (Cout, 1)
    out    : (1, Cout, TILE_T)
    """
    if has_halo:
        x_main_ref, x_lh_ref, x_rh_ref, w_ref, b_ref, g_ref, beta_ref, o_ref = refs
    else:
        x_main_ref, w_ref, b_ref, g_ref, beta_ref, o_ref = refs
        x_lh_ref = x_rh_ref = None

    pad = kernel_size // 2
    t = pl.program_id(1)

    main = x_main_ref[0]                                      # (Cin, TILE_T), native dtype
    if pad > 0:
        window = jnp.concatenate(
            [x_lh_ref[0][:, HALO_BLK - pad:], main, x_rh_ref[0][:, :pad]], axis=-1)
    else:
        window = main

    if need_mask:
        # window[:, m] is meant to be x[:, t*TILE_T - pad + m]; any position outside
        # [0, seq_len) must read as zero (Conv1d zero padding, clamped halo blocks and
        # the garbage tail of a ragged last tile are all zeroed here).
        cin, wlen = window.shape
        abs_pos = (t * tile_t - pad) + lax.broadcasted_iota(jnp.int32, (cin, wlen), 1)
        window = jnp.where((abs_pos >= 0) & (abs_pos < seq_len), window, 0)

    # --- Conv1d: all K taps fused into a single matmul (in-kernel im2col) ---
    if kernel_size > 1:
        rhs = jnp.concatenate(
            [window[:, j:j + tile_t] for j in range(kernel_size)], axis=0)
    else:
        rhs = window
    acc = jnp.dot(w_ref[...], rhs, preferred_element_type=jnp.float32)   # (Cout, TILE_T) f32
    acc = acc + b_ref[...].astype(jnp.float32)

    # --- ReLU ---
    acc = jnp.maximum(acc, 0.0)

    # --- LayerNorm over channels (sublane axis); two-pass stats for torch parity ---
    cout = acc.shape[0]
    inv_c = 1.0 / cout
    mean = jnp.sum(acc, axis=0, keepdims=True) * inv_c
    centered = acc - mean
    var = jnp.sum(centered * centered, axis=0, keepdims=True) * inv_c
    normed = centered * lax.rsqrt(var + LN_EPS)
    out = normed * g_ref[...].astype(jnp.float32) + beta_ref[...].astype(jnp.float32)

    # TODO(synk): 'layernorm' conditioning (cond_weight/cond_bias Linear on a conditioning
    #             vector) not implemented; default condition_types=[] is a plain LayerNorm.
    # TODO(synk): Dropout(p=0.0) / eval mode -> identity, no RNG path emitted.
    o_ref[0] = out.astype(o_ref.dtype)


def conv_relu_norm(signal, weight, bias, gamma, beta, *, tile_t=None):
    """Fused ConvReLUNorm forward.

    signal : (B, Cin, T)      PyTorch NCW layout (consumed directly, no transpose)
    weight : (Cout, Cin, K)   PyTorch Conv1d weight layout
    bias, gamma, beta : (Cout,)
    returns: (B, Cout, T)
    """
    B, Cin, T = signal.shape
    Cout, wcin, K = weight.shape
    assert wcin == Cin, "weight/in_channels mismatch"
    if K % 2 == 0:
        # Conv1d(padding=K//2) gives output length T+1 for even K; not supported here.
        raise NotImplementedError("only odd kernel_size is supported")
    pad = K // 2

    if tile_t is None:
        # Biggest lane-dense tile up to 512 (keeps double-buffered VMEM bounded on v7x
        # while leaving many grid steps to pipeline for long sequences).
        tile_t = min(512, pl.cdiv(T, HALO_BLK) * HALO_BLK)
    assert tile_t % HALO_BLK == 0, "tile_t must be a multiple of 128 (lane-dense blocks)"
    assert pad <= HALO_BLK, "kernel too wide for a single 128-lane halo block"

    nt = pl.cdiv(T, tile_t)          # number of time tiles (last one may be partial)
    nhb = pl.cdiv(T, HALO_BLK)       # number of 128-lane blocks along time
    bpt = tile_t // HALO_BLK         # 128-lane blocks per tile
    has_halo = pad > 0
    need_mask = has_halo or (T % tile_t != 0)

    # Tiny parameter-only reshapes (negligible HBM traffic).
    # lhs[o, j*Cin + c] = weight[o, c, j]  to match the im2col row ordering in-kernel.
    w2 = jnp.transpose(weight, (0, 2, 1)).reshape(Cout, K * Cin)
    b2 = bias.reshape(Cout, 1)
    g2 = gamma.reshape(Cout, 1)
    be2 = beta.reshape(Cout, 1)

    kernel = functools.partial(
        _conv_relu_norm_kernel, seq_len=T, tile_t=tile_t, kernel_size=K,
        has_halo=has_halo, need_mask=need_mask)

    in_specs = [pl.BlockSpec((1, Cin, tile_t), lambda b, t: (b, 0, t))]
    operands = [signal]
    if has_halo:
        in_specs += [
            # 128-lane block immediately left of the tile (clamped; zeroed by mask at t=0)
            pl.BlockSpec((1, Cin, HALO_BLK),
                         lambda b, t: (b, 0, jnp.maximum(t * bpt - 1, 0))),
            # 128-lane block immediately right of the tile (clamped; zeroed by mask at tail)
            pl.BlockSpec((1, Cin, HALO_BLK),
                         lambda b, t: (b, 0, jnp.minimum((t + 1) * bpt, nhb - 1))),
        ]
        operands += [signal, signal]
    in_specs += [
        pl.BlockSpec((Cout, K * Cin), lambda b, t: (0, 0)),
        pl.BlockSpec((Cout, 1), lambda b, t: (0, 0)),
        pl.BlockSpec((Cout, 1), lambda b, t: (0, 0)),
        pl.BlockSpec((Cout, 1), lambda b, t: (0, 0)),
    ]
    operands += [w2, b2, g2, be2]

    itemsize = signal.dtype.itemsize
    cost = pl.CostEstimate(
        flops=2 * B * T * K * Cin * Cout + 10 * B * T * Cout,
        transcendentals=B * T,
        bytes_accessed=(B * Cin * T + B * Cout * T) * itemsize
                       + w2.size * w2.dtype.itemsize,
    )

    return pl.pallas_call(
        kernel,
        out_shape=jax.ShapeDtypeStruct((B, Cout, T), signal.dtype),
        grid=(B, nt),
        in_specs=in_specs,
        out_specs=pl.BlockSpec((1, Cout, tile_t), lambda b, t: (b, 0, t)),
        compiler_params=pltpu.CompilerParams(
            dimension_semantics=("parallel", "parallel")),
        cost_estimate=cost,
    )(*operands)


def reference(signal, weight, bias, gamma, beta):
    """Pure-JAX reference (matches torch Conv1d + ReLU + LayerNorm-over-channels)."""
    x = signal.astype(jnp.float32)
    w = weight.astype(jnp.float32)
    K = weight.shape[-1]
    pad = K // 2
    out = lax.conv_general_dilated(
        x, w, window_strides=(1,), padding=[(pad, pad)],
        dimension_numbers=("NCH", "OIH", "NCH"))
    out = jnp.maximum(out + bias.astype(jnp.float32)[None, :, None], 0.0)
    mean = jnp.mean(out, axis=1, keepdims=True)
    var = jnp.mean((out - mean) ** 2, axis=1, keepdims=True)
    out = (out - mean) * lax.rsqrt(var + LN_EPS)
    out = out * gamma.astype(jnp.float32)[None, :, None] \
          + beta.astype(jnp.float32)[None, :, None]
    return out.astype(signal.dtype)


if __name__ == "__main__":
    key = jax.random.PRNGKey(0)
    k_x, k_w, k_b, k_x2, k_w1 = jax.random.split(key, 5)

    # Small shapes consistent with ConvReLUNorm.forward: signal is (B, C_in, T).
    B, Cin, Cout, T, K = 2, 4, 8, 16, 3
    signal = jax.random.normal(k_x, (B, Cin, T), dtype=jnp.float32)
    weight = jax.random.normal(k_w, (Cout, Cin, K), dtype=jnp.float32) * 0.2  # (Cout,Cin,K)
    bias = jax.random.normal(k_b, (Cout,), dtype=jnp.float32) * 0.1
    gamma = jnp.ones((Cout,), jnp.float32)    # LayerNorm default init
    beta = jnp.zeros((Cout,), jnp.float32)

    out = conv_relu_norm(signal, weight, bias, gamma, beta)
    jax.block_until_ready(out)
    ref = reference(signal, weight, bias, gamma, beta)
    assert out.shape == (B, Cout, T)
    assert jnp.allclose(out, ref, atol=1e-4, rtol=1e-4), \
        float(jnp.max(jnp.abs(out - ref)))

    # Multiple time tiles, real halo reads, ragged last tile.
    T2 = 300
    signal2 = jax.random.normal(k_x2, (B, Cin, T2), dtype=jnp.float32)
    out2 = conv_relu_norm(signal2, weight, bias, gamma, beta, tile_t=128)
    jax.block_until_ready(out2)
    ref2 = reference(signal2, weight, bias, gamma, beta)
    assert out2.shape == (B, Cout, T2)
    assert jnp.allclose(out2, ref2, atol=1e-4, rtol=1e-4), \
        float(jnp.max(jnp.abs(out2 - ref2)))

    # kernel_size=1 (the module default) -> halo-free fast path.
    weight1 = jax.random.normal(k_w1, (Cout, Cin, 1), dtype=jnp.float32) * 0.2
    out3 = conv_relu_norm(signal, weight1, bias, gamma, beta)
    jax.block_until_ready(out3)
    ref3 = reference(signal, weight1, bias, gamma, beta)
    assert out3.shape == (B, Cout, T)
    assert jnp.allclose(out3, ref3, atol=1e-4, rtol=1e-4), \
        float(jnp.max(jnp.abs(out3 - ref3)))

    print("KERNEL_OK")
</pallas_src>

<mosaic_0001>
module attributes {stable_mosaic.version = 11 : i64} {
  func.func @_conv_relu_norm_kernel(%arg0: i32, %arg1: i32, %arg2: memref<1x4x128xf32, #tpu.memory_space<vmem>>, %arg3: memref<1x4x128xf32, #tpu.memory_space<vmem>>, %arg4: memref<1x4x128xf32, #tpu.memory_space<vmem>>, %arg5: memref<8x12xf32, #tpu.memory_space<vmem>>, %arg6: memref<8x1xf32, #tpu.memory_space<vmem>>, %arg7: memref<8x1xf32, #tpu.memory_space<vmem>>, %arg8: memref<8x1xf32, #tpu.memory_space<vmem>>, %arg9: memref<1x8x128xf32, #tpu.memory_space<vmem>>) attributes {dimension_semantics = [#tpu.dimension_semantics<parallel>, #tpu.dimension_semantics<parallel>], iteration_bounds = array<i64: 2, 1>, scalar_prefetch = 0 : i64, scratch_operands = 0 : i64, tpu.core_type = #tpu.core_type<tc>, window_params = [{transform_indices = @transform_0, window_bounds = array<i64: 1, 4, 128>}, {transform_indices = @transform_1, window_bounds = array<i64: 1, 4, 128>}, {transform_indices = @transform_2, window_bounds = array<i64: 1, 4, 128>}, {pipeline_mode = #tpu.pipeline_mode<synchronous>, transform_indices = @transform_3, window_bounds = array<i64: 8, 12>}, {pipeline_mode = #tpu.pipeline_mode<synchronous>, transform_indices = @transform_4, window_bounds = array<i64: 8, 1>}, {pipeline_mode = #tpu.pipeline_mode<synchronous>, transform_indices = @transform_5, window_bounds = array<i64: 8, 1>}, {pipeline_mode = #tpu.pipeline_mode<synchronous>, transform_indices = @transform_6, window_bounds = array<i64: 8, 1>}, {transform_indices = @transform_7, window_bounds = array<i64: 1, 8, 128>}]} {
    %c0 = arith.constant 0 : index
    %c0_0 = arith.constant 0 : index
    %c0_1 = arith.constant 0 : index
    %0 = vector.load %arg2[%c0, %c0_0, %c0_1] : memref<1x4x128xf32, #tpu.memory_space<vmem>>, vector<1x4x128xf32>
    %1 = vector.shape_cast %0 : vector<1x4x128xf32> to vector<4x128xf32>
    %c0_2 = arith.constant 0 : index
    %c0_3 = arith.constant 0 : index
    %c0_4 = arith.constant 0 : index
    %2 = vector.load %arg3[%c0_2, %c0_3, %c0_4] : memref<1x4x128xf32, #tpu.memory_space<vmem>>, vector<1x4x128xf32>
    %3 = vector.shape_cast %2 : vector<1x4x128xf32> to vector<4x128xf32>
    %4 = vector.extract_strided_slice %3 {offsets = [0, 127], sizes = [4, 1], strides = [1, 1]} : vector<4x128xf32> to vector<4x1xf32>
    %c0_5 = arith.constant 0 : index
    %c0_6 = arith.constant 0 : index
    %c0_7 = arith.constant 0 : index
    %5 = vector.load %arg4[%c0_5, %c0_6, %c0_7] : memref<1x4x128xf32, #tpu.memory_space<vmem>>, vector<1x4x128xf32>
    %6 = vector.shape_cast %5 : vector<1x4x128xf32> to vector<4x128xf32>
    %7 = vector.extract_strided_slice %6 {offsets = [0, 0], sizes = [4, 1], strides = [1, 1]} : vector<4x128xf32> to vector<4x1xf32>
    %8 = tpu.concatenate %4, %1, %7 in 1 : vector<4x1xf32>, vector<4x128xf32>, vector<4x1xf32> -> vector<4x130xf32>
    %c128_i32 = arith.constant 128 : i32
    %9 = arith.muli %arg1, %c128_i32 : i32
    %c1_i32 = arith.constant 1 : i32
    %10 = arith.subi %9, %c1_i32 : i32
    %11 = tpu.iota {dimensions = array<i32: 1>} : vector<4x130xi32>
    %12 = vector.broadcast %10 : i32 to vector<4x130xi32>
    %13 = arith.addi %12, %11 : vector<4x130xi32>
    %c0_i32 = arith.constant 0 : i32
    %14 = vector.broadcast %c0_i32 : i32 to vector<4x130xi32>
    %15 = arith.cmpi sge, %13, %14 : vector<4x130xi32>
    %c16_i32 = arith.constant 16 : i32
    %16 = vector.broadcast %c16_i32 : i32 to vector<4x130xi32>
    %17 = arith.cmpi slt, %13, %16 : vector<4x130xi32>
    %18 = arith.andi %15, %17 : vector<4x130xi1>
    %c0_i32_8 = arith.constant 0 : i32
    %19 = arith.sitofp %c0_i32_8 : i32 to f32
    %20 = vector.broadcast %19 : f32 to vector<4x130xf32>
    %21 = arith.select %18, %8, %20 : vector<4x130xi1>, vector<4x130xf32>
    %22 = vector.extract_strided_slice %21 {offsets = [0, 0], sizes = [4, 128], strides = [1, 1]} : vector<4x130xf32> to vector<4x128xf32>
    %23 = vector.extract_strided_slice %21 {offsets = [0, 1], sizes = [4, 128], strides = [1, 1]} : vector<4x130xf32> to vector<4x128xf32>
    %24 = vector.extract_strided_slice %21 {offsets = [0, 2], sizes = [4, 128], strides = [1, 1]} : vector<4x130xf32> to vector<4x128xf32>
    %25 = tpu.concatenate %22, %23, %24 in 0 : vector<4x128xf32>, vector<4x128xf32>, vector<4x128xf32> -> vector<12x128xf32>
    %c0_9 = arith.constant 0 : index
    %c0_10 = arith.constant 0 : index
    %26 = vector.load %arg5[%c0_9, %c0_10] : memref<8x12xf32, #tpu.memory_space<vmem>>, vector<8x12xf32>
    %cst = arith.constant dense<0.000000e+00> : vector<8x128xf32>
    %27 = tpu.matmul %26, %25, %cst {dimension_numbers = #tpu.dot_dimension_numbers<[1], [0], [0], [1], [0, 0, 1, 1], [], []>} : vector<8x12xf32>, vector<12x128xf32>, vector<8x128xf32> -> vector<8x128xf32>
    %c0_11 = arith.constant 0 : index
    %c0_12 = arith.constant 0 : index
    %28 = vector.load %arg6[%c0_11, %c0_12] : memref<8x1xf32, #tpu.memory_space<vmem>>, vector<8x1xf32>
    %29 = vector.broadcast %28 : vector<8x1xf32> to vector<8x128xf32>
    %30 = arith.addf %27, %29 : vector<8x128xf32>
    %cst_13 = arith.constant 0.000000e+00 : f32
    %31 = vector.broadcast %cst_13 : f32 to vector<8x128xf32>
    %32 = arith.maximumf %30, %31 : vector<8x128xf32>
    %cst_14 = arith.constant dense<0.000000e+00> : vector<128xf32>
    %33 = vector.multi_reduction <add>, %32, %cst_14 [0] : vector<8x128xf32> to vector<128xf32>
    %34 = vector.shape_cast %33 : vector<128xf32> to vector<1x128xf32>
    %cst_15 = arith.constant 1.250000e-01 : f32
    %35 = vector.broadcast %cst_15 : f32 to vector<1x128xf32>
    %36 = arith.mulf %34, %35 : vector<1x128xf32>
    %37 = vector.broadcast %36 : vector<1x128xf32> to vector<8x128xf32>
    %38 = arith.subf %32, %37 : vector<8x128xf32>
    %39 = arith.mulf %38, %38 : vector<8x128xf32>
    %cst_16 = arith.constant dense<0.000000e+00> : vector<128xf32>
    %40 = vector.multi_reduction <add>, %39, %cst_16 [0] : vector<8x128xf32> to vector<128xf32>
    %41 = vector.shape_cast %40 : vector<128xf32> to vector<1x128xf32>
    %cst_17 = arith.constant 1.250000e-01 : f32
    %42 = vector.broadcast %cst_17 : f32 to vector<1x128xf32>
    %43 = arith.mulf %41, %42 : vector<1x128xf32>
    %cst_18 = arith.constant 9.99999974E-6 : f32
    %44 = vector.broadcast %cst_18 : f32 to vector<1x128xf32>
    %45 = arith.addf %43, %44 : vector<1x128xf32>
    %46 = math.rsqrt %45 : vector<1x128xf32>
    %47 = vector.broadcast %46 : vector<1x128xf32> to vector<8x128xf32>
    %48 = arith.mulf %38, %47 : vector<8x128xf32>
    %c0_19 = arith.constant 0 : index
    %c0_20 = arith.constant 0 : index
    %49 = vector.load %arg7[%c0_19, %c0_20] : memref<8x1xf32, #tpu.memory_space<vmem>>, vector<8x1xf32>
    %50 = vector.broadcast %49 : vector<8x1xf32> to vector<8x128xf32>
    %51 = arith.mulf %48, %50 : vector<8x128xf32>
    %c0_21 = arith.constant 0 : index
    %c0_22 = arith.constant 0 : index
    %52 = vector.load %arg8[%c0_21, %c0_22] : memref<8x1xf32, #tpu.memory_space<vmem>>, vector<8x1xf32>
    %53 = vector.broadcast %52 : vector<8x1xf32> to vector<8x128xf32>
    %54 = arith.addf %51, %53 : vector<8x128xf32>
    %c0_23 = arith.constant 0 : index
    %c0_24 = arith.constant 0 : index
    %c0_25 = arith.constant 0 : index
    %55 = vector.load %arg9[%c0_23, %c0_24, %c0_25] : memref<1x8x128xf32, #tpu.memory_space<vmem>>, vector<1x8x128xf32>
    %56 = vector.shape_cast %55 : vector<1x8x128xf32> to vector<8x128xf32>
    %57 = vector.shape_cast %54 : vector<8x128xf32> to vector<1x8x128xf32>
    tpu.vector_store %arg9[%c0_23, %c0_24, %c0_25], %57 {strides = array<i32>} : memref<1x8x128xf32, #tpu.memory_space<vmem>>, vector<1x8x128xf32>,
    return
  }
  func.func @transform_0(%arg0: i32, %arg1: i32) -> (i32, i32, i32) {
    %c0_i32 = arith.constant 0 : i32
    %c0_i32_0 = arith.constant 0 : i32
    return %arg0, %c0_i32, %arg1 : i32, i32, i32
  }
  func.func @transform_1(%arg0: i32, %arg1: i32) -> (i32, i32, i32) {
    %c1_i32 = arith.constant 1 : i32
    %0 = arith.muli %arg1, %c1_i32 : i32
    %c1_i32_0 = arith.constant 1 : i32
    %1 = arith.subi %0, %c1_i32_0 : i32
    %c0_i32 = arith.constant 0 : i32
    %2 = arith.maxsi %1, %c0_i32 : i32
    %c0_i32_1 = arith.constant 0 : i32
    %c0_i32_2 = arith.constant 0 : i32
    return %arg0, %c0_i32_1, %2 : i32, i32, i32
  }
  func.func @transform_2(%arg0: i32, %arg1: i32) -> (i32, i32, i32) {
    %c1_i32 = arith.constant 1 : i32
    %0 = arith.addi %arg1, %c1_i32 : i32
    %c1_i32_0 = arith.constant 1 : i32
    %1 = arith.muli %0, %c1_i32_0 : i32
    %c0_i32 = arith.constant 0 : i32
    %2 = arith.minsi %1, %c0_i32 : i32
    %c0_i32_1 = arith.constant 0 : i32
    %c0_i32_2 = arith.constant 0 : i32
    return %arg0, %c0_i32_1, %2 : i32, i32, i32
  }
  func.func @transform_3(%arg0: i32, %arg1: i32) -> (i32, i32) {
    %c0_i32 = arith.constant 0 : i32
    %c0_i32_0 = arith.constant 0 : i32
    %c0_i32_1 = arith.constant 0 : i32
    return %c0_i32, %c0_i32_0 : i32, i32
  }
  func.func @transform_4(%arg0: i32, %arg1: i32) -> (i32, i32) {
    %c0_i32 = arith.constant 0 : i32
    %c0_i32_0 = arith.constant 0 : i32
    %c0_i32_1 = arith.constant 0 : i32
    return %c0_i32, %c0_i32_0 : i32, i32
  }
  func.func @transform_5(%arg0: i32, %arg1: i32) -> (i32, i32) {
    %c0_i32 = arith.constant 0 : i32
    %c0_i32_0 = arith.constant 0 : i32
    %c0_i32_1 = arith.constant 0 : i32
    return %c0_i32, %c0_i32_0 : i32, i32
  }
  func.func @transform_6(%arg0: i32, %arg1: i32) -> (i32, i32) {
    %c0_i32 = arith.constant 0 : i32
    %c0_i32_0 = arith.constant 0 : i32
    %c0_i32_1 = arith.constant 0 : i32
    return %c0_i32, %c0_i32_0 : i32, i32
  }
  func.func @transform_7(%arg0: i32, %arg1: i32) -> (i32, i32, i32) {
    %c0_i32 = arith.constant 0 : i32
    %c0_i32_0 = arith.constant 0 : i32
    return %arg0, %c0_i32, %arg1 : i32, i32, i32
  }
}

</mosaic_0001>

<bundles_post_ra>
// kernel: tpu_custom_call.1
= control target key start
LH: loop header
LB: loop body
LE: loop exit
PB: predicated region body
PF: predicated region fallthrough
CT: control target
= control target key end

     0   :  { %12 = vsyncpa [#allocation3], 0  ;;  %s1051_s0 = inlined_call_operand.vmem [shape: f32[2,4,16], index: 0, kind: input, shape index: {}]   ;;  %s1052_s1 = inlined_call_operand.vmem [shape: f32[2,4,16], index: 1, kind: input, shape index: {}]   ;;  %s1053_s2 = inlined_call_operand.vmem [shape: f32[2,4,16], index: 2, kind: input, shape index: {}]   ;;  %s1054_s3 = inlined_call_operand.vmem [shape: f32[8,12], index: 3, kind: input, shape index: {}]   ;;  %s1055_s4 = inlined_call_operand.vmem [shape: f32[8,1], index: 4, kind: input, shape index: {}]   ;;  %s1056_s5 = inlined_call_operand.vmem [shape: f32[8,1], index: 5, kind: input, shape index: {}]   ;;  %s1057_s6 = inlined_call_operand.vmem [shape: f32[8,1], index: 6, kind: input, shape index: {}]   ;;  %s1058_s7 = inlined_call_operand.hbm [shape: f32[2,8,16], index: 7, kind: output, shape index: {}]  }
   0x1   :  { %14 = vsyncpa [#allocation3 + $0x1], 0  ;;  %s924_s24 = smov 0   ;;  %s926_s2 = smov 0  }
   0x2   :  { %s928_s25 = smov 0   ;;  %s930_s26 = smov 0  }
   0x3   :  { %s932_s27 = smov 0   ;;  %s934_s28 = smov 0  }
   0x4 LB: > { %s684_s29 = sadd.s32 4294967295, %s873_s28   ;;  %s685_s30 = sadd.s32 4294967294, %s873_s28   ;;  %s873_s28 = sphi %s934_s28, %s20_s28   ;;  %s869_s27 = sphi %s932_s27, %s1065_s27   ;;  %s865_s26 = sphi %s930_s26, %s1064_s26   ;;  %s861_s25 = sphi %s928_s25, %s1063_s25   ;;  %s857_s2 = sphi %s926_s2, %s1062_s2   ;;  %s853_s24 = sphi %s924_s24, %s1061_s24  }
   0x5   : > { %s32_s8 = sadd.s32 1, %s869_s27  ;;  %s221_s9 = sadd.s32 1, %s861_s25 }
   0x6   : > { %p34_p0 = scmp.ge.s32.totalorder %s32_s8, 2  ;;  %p231_p1 = scmp.ne.s32.totalorder %s861_s25, %s857_s2 }
   0x7   : > { %p232_p2 = scmp.eq.s32.totalorder %s684_s29, 1  ;;  %p237_p3 = scmp.ne.s32.totalorder %s857_s2, %s853_s24 }
   0x8   : > { %s1067_s8 = smov (%p34_p0, %s32_s8), 0  ;;  %p238_p5 = scmp.eq.s32.totalorder %s685_s30, 1 }
   0x9   : > { %p964_p4 = por %p232_p2, %p231_p1  ;;  %s216_s11 = ssub.s32 %s869_s27, %s1067_s8 }
   0xa   : > { %p688_p6 = scmp.ge.s32.totalorder %s873_s28, 1  ;;  %p219_p7 = scmp.eq.s32.totalorder %s216_s11, 0 }
   0xb   : > { %p971_p8 = por %p238_p5, %p237_p3  ;;  %p310_p9 = scmp.lt.s32.totalorder %s873_s28, 3 }
   0xc   : > { %s977_s13 = scalar_select %p219_p7, %s861_s25, %s221_s9  }
   0xd   : > { %p311_p10 = pnand %p688_p6, %p310_p9 }
   0xe   : > { %p364_p11 = scmp.lt.s32.totalorder (!%p311_p10), %s865_s26, 1  ;;  %s875_s22 = smov (!%p311_p10), 1   ;;  %v417_v3 = vlaneseq (!%p311_p10)  ;;  %v876_v6 = vmov (!%p311_p10), 0.0|0.0   ;;  %vm412_vm2 = vcmask (!%p311_p10), 7168   ;;  %v877_v11 = vmov (!%p311_p10), 0.0   ;;  %v451_v18 = vld [vmem:[%s1055_s4] sm:$0xff] (!%p311_p10) }
   0xf   : > { %314 = sbr.rel (%p311_p10) target bundleno = 558 (0x22e), region = 48  ;;  %709 = vmatprep.subr.bf16.mxu0 (!%p311_p10), %v876_v6  ;;  %v434_v12 = vrot.slane (!%p311_p10), %v877_v11, 4  ;;  %vm878_vm4 = vmmov (!%p311_p10), 0   ;;  %v879_v16 = vmov (!%p311_p10), 0   ;;  %s880_s23 = smov (!%p311_p10), 126   ;;  %v553_v19 = vld [vmem:[%s1056_s5] sm:$0xff] (!%p311_p10) }
  0x10   : > { %v418_v4 = vand.u32 (!%p311_p10), 127, %v417_v3  ;;  %706 = vmatprep.mubr.msk.f32.mxu0 (!%p311_p10), %vm878_vm4, %v877_v11  ;;  %791 = vset.pattern.permute.xlu1 (!%p311_p10), %v879_v16  ;;  %s881_s9 = smov (!%p311_p10), 127   ;;  %v560_v20 = vld [vmem:[%s1057_s6] sm:$0xff] (!%p311_p10)  ;;  %vm439_vm5 = vcmask (!%p311_p10), 1039360   ;;  %vm446_vm6 = vcmask (!%p311_p10), 1031168   ;;  %vm448_vm7 = vcmask (!%p311_p10), 1043456  }
  0x11   : > { %792 = vset.pattern.permute.xlu0 (!%p311_p10), %v879_v16  ;;  %vm882_vm8 = vmmov (!%p311_p10), 1   ;;  %v450_v31 = vld [vmem:[%s1054_s3] sm:$0xff] (!%p311_p10)  ;;  %vm457_vm10 = vcmask (!%p311_p10), 97280   ;;  %s361_s19 = sand.u32 (!%p311_p10), 1, %s857_s2  }
  0x12   : > { %v421_v5 = vadd.s32 (!%p311_p10), 4294967295, %v418_v4  ;;  %vm711_vm9 = vmpackc.low (!%p311_p10), %vm448_vm7, %vm882_vm8  ;;  %s689_s20 = sshll.u32 (!%p311_p10), %s361_s19, 3  ;;  %s569_s11 = scalar_lea.sflag (!%p311_p10), [#allocation3], %s361_s19 }
  0x14   : > { %vm423_vm0 = vcmp.ge.s32.totalorder (!%p311_p10), %v421_v5, 0  ;;  %vm425_vm1 = vcmp.lt.s32.totalorder (!%p311_p10), %v421_v5, 16 }
  0x15   : > { %vm427_vm3 = vmand (!%p311_p10), %vm423_vm0, %vm425_vm1 }
  0x16   : > { %s365_s14 = scalar_select %p364_p11, %s865_s26, 1 }
  0x18   : > { %s690_s15 = sshll.u32 %s365_s14, 2 }
  0x19   : > { %s370_s18 = scalar_lea.vmem %s1051_s0, %s690_s15  ;;  %s380_s21 = scalar_lea.vmem %s1052_s1, %s690_s15 }
  0x1a   : > { %v397_v0 = vld [vmem:[%s370_s18] sm:$0xf] }
  0x1b   : > { %v398_v1 = vld [vmem:[%s380_s21] sm:$0xf]  ;;  %s696_s21 = sshll.u32 %s865_s26, 7  ;;  %s883_s26 = smov [#allocation2]  }
  0x1c   : > { %v776_v2 = vpack.i.bf16 %v397_v0, %v398_v1  ;;  %s799_s15 = sshll.u32 %s883_s26, 4  ;;  %s800_s15 = int_to_ptr.vmem [resolvable:$false] %s799_s15 }
  0x1d   : > { %s801_s16 = scalar_lea.vmem %s800_s15, 256 }
  0x1e   : > { %777 = vrot.lane.b32.xlu0 %v776_v2, %s875_s22  ;;  %s363_s22 = scalar_lea.vmem [#allocation2], %s689_s20 }
  0x90   : > { %v778_v7 = vpop.permute.xlu0 %777 }
  0x91   : > { %v780_v8 = vunpack.i.h.bf16 %v778_v7  ;;  %v779_v9 = vunpack.i.l.bf16 %v778_v7 }
  0x93   : > { %v413_v10 = vsel %vm412_vm2, %v779_v9, %v780_v8 }
  0x94   : > { %v429_v13 = vsel %vm427_vm3, %v413_v10, 0.0 }
  0x95   : > { %v786_v14 = vpack.i.bf16 %v877_v11, %v429_v13  ;;  %v433_v15 = vrot.slane %v429_v13, 4 }
  0x97   : > { %787 = vrot.lane.b32.xlu1 %v786_v14, %s880_s23  ;;  %v781_v17 = vpack.i.bf16 %v434_v12, %v433_v15  ;;  %s583_s23 = sshll.u32 %s363_s22, 4  ;;  %s1006_s23 = int_to_ptr.vmem [resolvable:$true] %s583_s23 }
  0x98   : > { %s795_s14 = scalar_lea.vmem %s1006_s23, 128  ;;  %p802_p1 = scmp.lt.s32.totalorder %s1006_s23, %s800_s15 }
  0x99   : > { %782 = vrot.lane.b32.xlu0 %v781_v17, %s881_s9  ;;  %s1004_s9 = scalar_lea.hbm %s1058_s7, %s696_s21  ;;  %p796_p12 = scmp.ne.s32.totalorder %s1006_s23, %s795_s14 }
  0x9a   : > { %p803_p2 = scmp.lt.s32.totalorder %s801_s16, %s795_s14 }
  0x9b   : > { %454 = vperm.xlu1 %791, %v451_v18   ;;  %p797_p13 = pnand %p796_p12, %p964_p4 }
  0x9c   : > { %p804_p3 = por %p803_p2, %p802_p1 }
  0x9d   : > { %556 = vperm.xlu0 %792, %v553_v19   ;;  %p798_p0 = pneg %p797_p13 }
  0x9f   : > { %563 = vperm.xlu1 %791, %v560_v20   ;;  %p805_p5 = pnand %p804_p3, %p798_p0 }
 0x109   : > { %v788_v21 = vpop.permute.xlu1 %787 }
 0x10a   : > { %v790_v22 = vunpack.i.h.bf16 %v788_v21  ;;  %v789_v23 = vunpack.i.l.bf16 %v788_v21 }
 0x10b   : > { %v783_v24 = vpop.permute.xlu0 %782 }
 0x10c   : > { %v785_v25 = vunpack.i.h.bf16 %v783_v24  ;;  %v784_v26 = vunpack.i.l.bf16 %v783_v24  ;;  %v447_v28 = vsel %vm446_vm6, %v789_v23, %v790_v22 }
 0x10e   : > { %v440_v27 = vsel %vm439_vm5, %v784_v26, %v785_v25 }
 0x10f   : > { %v449_v29 = vsel %vm448_vm7, %v429_v13, %v440_v27 }
 0x110   : > { %v710_v30 = vpack.c.bf16 %v447_v28, %v449_v29 }
 0x112   : > { %712 = vmatpush3.bf16.msk.msra.mxu0 %vm711_vm9, %v710_v30 }
 0x115   : > { %707 = vmatmul.mubr.msk.f32.vlgmr.msra.gmra.mrb[0].mxu0 %vm457_vm10, %v450_v31 }
 0x11a   : > { %v455_v32 = vpop.permute.xlu1 %454 }
 0x11c   : > { %v557_v55 = vpop.permute.xlu0 %556 }
 0x11e   : > { %v564_v58 = vpop.permute.xlu1 %563 }
 0x1e8   : > { %v529_v33 = vpop.f32.mrb[0].mxu0 }
 0x1e9   : > { %v530_v34 = vadd.f32 %v529_v33, %v455_v32  ;;  %v708_v35 = vpop.f32.mrb[1].mxu0 }
 0x1eb   : > { %v533_v36 = vmax.f32 %v530_v34, 0.0 }
 0x1ed   : > { %v534_v37 = vrot.slane %v533_v36, 4 }
 0x1ef   : > { %v535_v38 = vadd.f32 %v534_v37, %v533_v36 }
 0x1f1   : > { %v536_v39 = vrot.slane %v535_v38, 2 }
 0x1f3   : > { %v537_v40 = vadd.f32 %v536_v39, %v535_v38 }
 0x1f5   : > { %v538_v41 = vrot.slane %v537_v40, 1 }
 0x1f7   : > { %v539_v42 = vadd.f32 %v538_v41, %v537_v40 }
 0x1f9   : > { %v540_v43 = vmul.f32 0.125, %v539_v42 }
 0x1fb   : > { %v541_v44 = vsub.f32 %v533_v36, %v540_v43 }
 0x1fd   : > { %v542_v45 = vmul.f32 %v541_v44, %v541_v44 }
 0x1ff   : > { %v543_v46 = vrot.slane %v542_v45, 4 }
 0x201   : > { %v544_v47 = vadd.f32 %v543_v46, %v542_v45 }
 0x203   : > { %v545_v48 = vrot.slane %v544_v47, 2 }
 0x205   : > { %v546_v49 = vadd.f32 %v545_v48, %v544_v47 }
 0x207   : > { %v547_v50 = vrot.slane %v546_v49, 1 }
 0x209   : > { %v548_v51 = vadd.f32 %v547_v50, %v546_v49 }
 0x20b   : > { %v549_v52 = vmul.f32 0.125, %v548_v51 }
 0x20d   : > { %v550_v53 = vadd.f32 1e-05, %v549_v52 }
 0x20f   : > { %793 = vrsqrt.f32 %v550_v53 }
 0x219   : > { %v794_v54 = vpop.eup %793 }
 0x21a   : > { %v552_v56 = vmul.f32 %v794_v54, %v541_v44 }
 0x21c   : > { %v559_v57 = vmul.f32 %v557_v55, %v552_v56 }
 0x21e   : > { %v566_v59 = vadd.f32 %v564_v58, %v559_v57 }
 0x220   : > { %567 = vst [vmem:[%s363_s22] sm:$0xff] %v566_v59 }
 0x221   : > { %808 = shalt.err (!%p805_p5)
}
 0x222   : > { %s809_s17 = scalar_lea.hbm %s1004_s9, 128  ;;  %s813_s20 = scalar_lea.hbm %s1058_s7, 256 }
 0x223   : > { %p810_p6 = scmp.ne.s32.totalorder %s1004_s9, %s809_s17  ;;  %p814_p10 = scmp.lt.u32.totalorder %s1004_s9, %s1058_s7 }
 0x224   : > { %p815_p11 = scmp.lt.u32.totalorder %s813_s20, %s809_s17  ;;  %p817_p13 = scmp.lt.u32.totalorder %s809_s17, %s1004_s9 }
 0x225   : > { %p811_p7 = pnand %p810_p6, %p964_p4 }
 0x226   : > { %p816_p12 = por %p815_p11, %p814_p10 }
 0x227   : > { %p812_p9 = pneg %p811_p7 }
 0x228   : > { %p818_p0 = por %p817_p13, %p816_p12 }
 0x22a   : > { %p819_p1 = pnand %p818_p0, %p812_p9 }
 0x22c   : > { %822 = shalt.err (!%p819_p1)
}
 0x22d   : > { %713 = dma.vmem_to_hbm [thread:$0]  (%p964_p4), %s1006_s23, 128, %s1004_s9, %s569_s11  }
 0x22e PF: > { %p719_p2 = scmp.ge.s32.totalorder %s873_s28, 2  ;;  %s595_s29 = sand.u32 1, %s853_s24  }
 0x22f   : > { %s596_s30 = scalar_lea.sflag [#allocation3], %s595_s29 }
 0x230   : > { %p716_p3 = pnand %p719_p2, %p971_p8 }
 0x232   : > { %848 = dma.done.wait (!%p716_p3), %s596_s30, 128  }
 0x233   : > { %850 = vsyncadd (!%p716_p3), %s596_s30, 4294967168  ;;  %s20_s28 = sadd.s32 1, %s873_s28   ;;  %s1061_s24 = smov %s857_s2 }
 0x234   : > { %p17_p5 = scmp.ge.s32.totalorder %s20_s28, 4   ;;  %s1062_s2 = smov %s861_s25 }
 0x235   : > { %s1063_s25 = smov %s977_s13  ;;  %s1064_s26 = smov %s869_s27 }
 0x236   : > { %s1065_s27 = smov %s1067_s8  ;;  %19 = sbr.rel (!%p17_p5) target bundleno = 4 (0x4), region = 89 }
 0x23d   :  { %601 = vsyncpa [#allocation3], 1 }
 0x23e   :  { %603 = vsyncpa [#allocation3 + $0x1], 1 }

</bundles_post_ra>
